<compile_context>
chip_gen: v7x
topology: tpu7x:2x2x1
jax: 0.10.0
libtpu: 0.0.40
codegen_flags: <defaults>
</compile_context>

<pallas_src>
import jax
import jax.numpy as jnp
from jax.experimental import pallas as pl
from jax.experimental.pallas import tpu as pltpu

# ----------------------------- configuration -----------------------------
B = 2            # batch
H = 4            # spatial height
W = 4            # spatial width
C = 32           # dim
NUM_HEADS = 4
HEAD_DIM = C // NUM_HEADS              # 8
ALL_HEAD_DIM = NUM_HEADS * HEAD_DIM    # 32
N = H * W                              # sequence length = 16
BN = B * N                             # fused matmul row dim = 32
SCALE = HEAD_DIM ** (-0.5)
QKV_BIAS = True


# ------------------------------ Pallas kernel ------------------------------
def attention_kernel(x_ref, wqkv_ref, bqkv_ref, wo_ref, bo_ref, o_ref):
    """Single invocation computes the whole batch.

    x_ref:    (B*N, C)   input tokens, f32
    wqkv_ref: (C, 3*D)   fused qkv weights, bf16, SCALE folded into the q columns
    bqkv_ref: (1, 3*D)   fused qkv bias [q_bias*SCALE | 0 | v_bias], f32
    wo_ref:   (D, C)     output-projection weights (W_proj^T), bf16
    bo_ref:   (1, C)     output-projection bias, f32
    o_ref:    (B*N, C)   output tokens, f32
    """
    D = ALL_HEAD_DIM

    # Fused QKV projection: one MXU call, bf16 operands, f32 accumulation.
    xb = x_ref[...].astype(jnp.bfloat16)                                      # (BN, C)
    qkv = jnp.dot(xb, wqkv_ref[...], preferred_element_type=jnp.float32)      # (BN, 3D)
    qkv = qkv + bqkv_ref[...]

    # Per-head attention.  The static lane slices below are the lanes->leading-dim
    # relayout of the fused QKV result (XLU work on one vreg of data); the batched
    # score / p@v dots per head are the same MXU-call count as a (head*batch)-batched
    # einsum, so nothing is lost by the static unroll.
    o_heads = []
    for h in range(NUM_HEADS):
        lo = h * HEAD_DIM
        q = qkv[:, 0 * D + lo:0 * D + lo + HEAD_DIM].reshape(B, N, HEAD_DIM)  # (B, N, hd)
        k = qkv[:, 1 * D + lo:1 * D + lo + HEAD_DIM].reshape(B, N, HEAD_DIM)
        v = qkv[:, 2 * D + lo:2 * D + lo + HEAD_DIM].reshape(B, N, HEAD_DIM)

        s = jnp.einsum('bnd,bmd->bnm', q, k,
                       preferred_element_type=jnp.float32)                    # (B, N, N)
        s = s - jnp.max(s, axis=-1, keepdims=True)
        p = jnp.exp(s)
        p = p / jnp.sum(p, axis=-1, keepdims=True)        # exact softmax denominator
        o = jnp.einsum('bnm,bmd->bnd', p, v,
                       preferred_element_type=jnp.float32)                    # (B, N, hd)
        o_heads.append(o.reshape(BN, HEAD_DIM))

    # Heads back to lanes (head-major columns, matching the PyTorch
    # transpose(1,2).reshape layout), then ONE fused output-projection matmul.
    o_cat = jnp.concatenate(o_heads, axis=-1)                                 # (BN, D)
    y = jnp.dot(o_cat.astype(jnp.bfloat16), wo_ref[...],
                preferred_element_type=jnp.float32) + bo_ref[...]             # (BN, C)
    o_ref[...] = y.astype(o_ref.dtype)


# --------------------------- parameter preparation ---------------------------
def prepare_params(w_qkv, q_bias, v_bias, w_proj, b_proj):
    """One-time layout of PyTorch-convention parameters for the kernel.

    w_qkv : (3D, C)  rows ordered [q | k | v]; within each D: head-major, head_dim-minor
    w_proj: (C, D),  b_proj: (C,),  q/v biases 1-D or None.
    """
    D = ALL_HEAD_DIM
    dt = w_qkv.dtype
    qb = q_bias if q_bias is not None else jnp.zeros((D,), dt)
    vb = v_bias if v_bias is not None else jnp.zeros((D,), dt)

    # F.linear computes x @ W^T; transpose once so the kernel does a plain x @ Wt.
    wqkv_t = w_qkv.T                                                          # (C, 3D)
    # Fold the attention SCALE into the q columns (and q bias):
    # (x @ Wq^T + bq) * scale == x @ (Wq^T * scale) + bq * scale.
    col_scale = jnp.concatenate([jnp.full((D,), SCALE, dt), jnp.ones((2 * D,), dt)])
    wqkv_t = wqkv_t * col_scale[None, :]
    bqkv = jnp.concatenate([qb * SCALE, jnp.zeros((D,), dt), vb]).reshape(1, 3 * D)

    wo_t = w_proj.T                                                           # (D, C)
    bo = b_proj.reshape(1, C)

    return (wqkv_t.astype(jnp.bfloat16), bqkv.astype(jnp.float32),
            wo_t.astype(jnp.bfloat16), bo.astype(jnp.float32))


# ------------------------------- wrapper -----------------------------------
@jax.jit
def attention_forward(x, params):
    """x: (B, H, W, C) float32; params: output of prepare_params."""
    wqkv, bqkv, wo, bo = params
    Bx, Hx, Wx, Cx = x.shape
    Nx = Hx * Wx
    D3 = 3 * ALL_HEAD_DIM
    x2 = x.reshape(Bx * Nx, Cx)

    out = pl.pallas_call(
        attention_kernel,
        out_shape=jax.ShapeDtypeStruct((Bx * Nx, Cx), x.dtype),
        grid_spec=pltpu.PrefetchScalarGridSpec(
            num_scalar_prefetch=0,
            grid=(1,),                                 # single step: whole batch at once
            in_specs=[
                pl.BlockSpec((Bx * Nx, Cx), lambda i: (0, 0)),
                pl.BlockSpec((Cx, D3), lambda i: (0, 0)),
                pl.BlockSpec((1, D3), lambda i: (0, 0)),
                pl.BlockSpec((ALL_HEAD_DIM, Cx), lambda i: (0, 0)),
                pl.BlockSpec((1, Cx), lambda i: (0, 0)),
            ],
            out_specs=pl.BlockSpec((Bx * Nx, Cx), lambda i: (0, 0)),
        ),
        compiler_params=pltpu.CompilerParams(
            dimension_semantics=("arbitrary",),
        ),
    )(x2, wqkv, bqkv, wo, bo)

    return out.reshape(Bx, Hx, Wx, Cx)


# --------------------------- pure-JAX reference -----------------------------
def attention_reference(x, w_qkv, q_bias, v_bias, w_proj, b_proj):
    Bx, Hx, Wx, Cx = x.shape
    Nx = Hx * Wx
    D = ALL_HEAD_DIM
    if q_bias is not None:
        bqkv = jnp.concatenate([q_bias, jnp.zeros_like(v_bias), v_bias])
    else:
        bqkv = jnp.zeros((3 * D,), x.dtype)
    xf = x.reshape(Bx, Nx, Cx)
    qkv = xf @ w_qkv.T + bqkv                                   # (B, N, 3D)
    qkv = qkv.reshape(Bx, Nx, 3, NUM_HEADS, HEAD_DIM).transpose(2, 0, 3, 1, 4)
    q, k, v = qkv[0], qkv[1], qkv[2]                            # (B, nh, N, hd)
    q = q * SCALE
    attn = jnp.einsum("bhnd,bhmd->bhnm", q, k)
    attn = jax.nn.softmax(attn, axis=-1)
    o = jnp.einsum("bhnm,bhmd->bhnd", attn, v)                  # (B, nh, N, hd)
    o = o.transpose(0, 2, 1, 3).reshape(Bx, Nx, D)
    o = o @ w_proj.T + b_proj
    return o.reshape(Bx, Hx, Wx, Cx)


# --------------------------------- main -------------------------------------
if __name__ == "__main__":
    key = jax.random.PRNGKey(0)
    kx, kw1, kb1q, kb1v, kw2, kb2 = jax.random.split(key, 6)

    x = jax.random.normal(kx, (B, H, W, C), dtype=jnp.float32)

    # PyTorch-convention parameters:
    #   qkv:  Linear(dim, 3*all_head_dim, bias=False) -> weight (3D, C)
    #   proj: Linear(all_head_dim, dim)               -> weight (C, D), bias (C,)
    w_qkv = jax.random.normal(kw1, (3 * ALL_HEAD_DIM, C), dtype=jnp.float32) / jnp.sqrt(C)
    q_bias = 0.1 * jax.random.normal(kb1q, (ALL_HEAD_DIM,), dtype=jnp.float32) if QKV_BIAS else None
    v_bias = 0.1 * jax.random.normal(kb1v, (ALL_HEAD_DIM,), dtype=jnp.float32) if QKV_BIAS else None
    w_proj = jax.random.normal(kw2, (C, ALL_HEAD_DIM), dtype=jnp.float32) / jnp.sqrt(ALL_HEAD_DIM)
    b_proj = 0.1 * jax.random.normal(kb2, (C,), dtype=jnp.float32)

    # One-time parameter preparation (transpose, scale folding, bf16 cast), then the call.
    params = prepare_params(w_qkv, q_bias, v_bias, w_proj, b_proj)
    out = attention_forward(x, params)
    out = jax.block_until_ready(out)

    ref = attention_reference(x, w_qkv, q_bias, v_bias, w_proj, b_proj)
    assert out.shape == (B, H, W, C), out.shape
    max_err = float(jnp.max(jnp.abs(out - ref)))
    # Tolerance reflects the deliberate bf16 MXU-operand cast in the two projection
    # matmuls (f32 accumulation); the softmax itself is exact f32.  Expected max error
    # is ~1e-2 on O(1) outputs; a layout/ordering bug would show up as O(1) error.
    assert jnp.allclose(out, ref, atol=2e-2, rtol=2e-2), max_err

    print("KERNEL_OK")
</pallas_src>

<mosaic_0001>
module attributes {stable_mosaic.version = 11 : i64} {
  func.func @attention_kernel(%arg0: i32, %arg1: memref<32x32xf32, #tpu.memory_space<vmem>>, %arg2: memref<32x96xbf16, #tpu.memory_space<vmem>>, %arg3: memref<1x96xf32, #tpu.memory_space<vmem>>, %arg4: memref<32x32xbf16, #tpu.memory_space<vmem>>, %arg5: memref<1x32xf32, #tpu.memory_space<vmem>>, %arg6: memref<32x32xf32, #tpu.memory_space<vmem>>) attributes {dimension_semantics = [#tpu.dimension_semantics<arbitrary>], iteration_bounds = array<i64: 1>, scalar_prefetch = 0 : i64, scratch_operands = 0 : i64, tpu.core_type = #tpu.core_type<tc>, window_params = [{pipeline_mode = #tpu.pipeline_mode<synchronous>, transform_indices = @transform_0, window_bounds = array<i64: 32, 32>}, {pipeline_mode = #tpu.pipeline_mode<synchronous>, transform_indices = @transform_1, window_bounds = array<i64: 32, 96>}, {pipeline_mode = #tpu.pipeline_mode<synchronous>, transform_indices = @transform_2, window_bounds = array<i64: 1, 96>}, {pipeline_mode = #tpu.pipeline_mode<synchronous>, transform_indices = @transform_3, window_bounds = array<i64: 32, 32>}, {pipeline_mode = #tpu.pipeline_mode<synchronous>, transform_indices = @transform_4, window_bounds = array<i64: 1, 32>}, {pipeline_mode = #tpu.pipeline_mode<synchronous>, transform_indices = @transform_5, window_bounds = array<i64: 32, 32>}]} {
    %c0 = arith.constant 0 : index
    %c0_0 = arith.constant 0 : index
    %0 = vector.load %arg1[%c0, %c0_0] : memref<32x32xf32, #tpu.memory_space<vmem>>, vector<32x32xf32>
    %1 = arith.truncf %0 : vector<32x32xf32> to vector<32x32xbf16>
    %c0_1 = arith.constant 0 : index
    %c0_2 = arith.constant 0 : index
    %2 = vector.load %arg2[%c0_1, %c0_2] : memref<32x96xbf16, #tpu.memory_space<vmem>>, vector<32x96xbf16>
    %cst = arith.constant dense<0.000000e+00> : vector<32x96xf32>
    %3 = tpu.matmul %1, %2, %cst {dimension_numbers = #tpu.dot_dimension_numbers<[1], [0], [0], [1], [0, 0, 1, 1], [], []>} : vector<32x32xbf16>, vector<32x96xbf16>, vector<32x96xf32> -> vector<32x96xf32>
    %c0_3 = arith.constant 0 : index
    %c0_4 = arith.constant 0 : index
    %4 = vector.load %arg3[%c0_3, %c0_4] : memref<1x96xf32, #tpu.memory_space<vmem>>, vector<1x96xf32>
    %5 = vector.broadcast %4 : vector<1x96xf32> to vector<32x96xf32>
    %6 = arith.addf %3, %5 : vector<32x96xf32>
    %7 = vector.extract_strided_slice %6 {offsets = [0, 0], sizes = [32, 8], strides = [1, 1]} : vector<32x96xf32> to vector<32x8xf32>
    %8 = vector.shape_cast %7 : vector<32x8xf32> to vector<2x16x8xf32>
    %9 = vector.extract_strided_slice %6 {offsets = [0, 32], sizes = [32, 8], strides = [1, 1]} : vector<32x96xf32> to vector<32x8xf32>
    %10 = vector.shape_cast %9 : vector<32x8xf32> to vector<2x16x8xf32>
    %11 = vector.extract_strided_slice %6 {offsets = [0, 64], sizes = [32, 8], strides = [1, 1]} : vector<32x96xf32> to vector<32x8xf32>
    %12 = vector.shape_cast %11 : vector<32x8xf32> to vector<2x16x8xf32>
    "tpu.trace_start"() <{level = 10 : i32, message = "bnd,bmd->bnm"}> : () -> ()
    %cst_5 = arith.constant dense<0.000000e+00> : vector<2x16x16xf32>
    %13 = tpu.matmul %8, %10, %cst_5 {dimension_numbers = #tpu.dot_dimension_numbers<[2], [2], [1], [1], [0, 0, 0, 1, 1, 1], [0], [0]>} : vector<2x16x8xf32>, vector<2x16x8xf32>, vector<2x16x16xf32> -> vector<2x16x16xf32>
    "tpu.trace_stop"() : () -> ()
    %cst_6 = arith.constant dense<0xFF800000> : vector<2x16xf32>
    %14 = vector.multi_reduction <maximumf>, %13, %cst_6 [2] : vector<2x16x16xf32> to vector<2x16xf32>
    %15 = vector.shape_cast %14 : vector<2x16xf32> to vector<2x16x1xf32>
    %16 = vector.broadcast %15 : vector<2x16x1xf32> to vector<2x16x16xf32>
    %17 = arith.subf %13, %16 : vector<2x16x16xf32>
    %18 = math.exp %17 : vector<2x16x16xf32>
    %cst_7 = arith.constant dense<0.000000e+00> : vector<2x16xf32>
    %19 = vector.multi_reduction <add>, %18, %cst_7 [2] : vector<2x16x16xf32> to vector<2x16xf32>
    %20 = vector.shape_cast %19 : vector<2x16xf32> to vector<2x16x1xf32>
    %21 = vector.broadcast %20 : vector<2x16x1xf32> to vector<2x16x16xf32>
    %22 = arith.divf %18, %21 : vector<2x16x16xf32>
    "tpu.trace_start"() <{level = 10 : i32, message = "bnm,bmd->bnd"}> : () -> ()
    %cst_8 = arith.constant dense<0.000000e+00> : vector<2x16x8xf32>
    %23 = tpu.matmul %22, %12, %cst_8 {dimension_numbers = #tpu.dot_dimension_numbers<[2], [1], [1], [2], [0, 0, 0, 1, 1, 2], [0], [0]>} : vector<2x16x16xf32>, vector<2x16x8xf32>, vector<2x16x8xf32> -> vector<2x16x8xf32>
    "tpu.trace_stop"() : () -> ()
    %24 = vector.shape_cast %23 : vector<2x16x8xf32> to vector<32x8xf32>
    %25 = vector.extract_strided_slice %6 {offsets = [0, 8], sizes = [32, 8], strides = [1, 1]} : vector<32x96xf32> to vector<32x8xf32>
    %26 = vector.shape_cast %25 : vector<32x8xf32> to vector<2x16x8xf32>
    %27 = vector.extract_strided_slice %6 {offsets = [0, 40], sizes = [32, 8], strides = [1, 1]} : vector<32x96xf32> to vector<32x8xf32>
    %28 = vector.shape_cast %27 : vector<32x8xf32> to vector<2x16x8xf32>
    %29 = vector.extract_strided_slice %6 {offsets = [0, 72], sizes = [32, 8], strides = [1, 1]} : vector<32x96xf32> to vector<32x8xf32>
    %30 = vector.shape_cast %29 : vector<32x8xf32> to vector<2x16x8xf32>
    "tpu.trace_start"() <{level = 10 : i32, message = "bnd,bmd->bnm"}> : () -> ()
    %cst_9 = arith.constant dense<0.000000e+00> : vector<2x16x16xf32>
    %31 = tpu.matmul %26, %28, %cst_9 {dimension_numbers = #tpu.dot_dimension_numbers<[2], [2], [1], [1], [0, 0, 0, 1, 1, 1], [0], [0]>} : vector<2x16x8xf32>, vector<2x16x8xf32>, vector<2x16x16xf32> -> vector<2x16x16xf32>
    "tpu.trace_stop"() : () -> ()
    %cst_10 = arith.constant dense<0xFF800000> : vector<2x16xf32>
    %32 = vector.multi_reduction <maximumf>, %31, %cst_10 [2] : vector<2x16x16xf32> to vector<2x16xf32>
    %33 = vector.shape_cast %32 : vector<2x16xf32> to vector<2x16x1xf32>
    %34 = vector.broadcast %33 : vector<2x16x1xf32> to vector<2x16x16xf32>
    %35 = arith.subf %31, %34 : vector<2x16x16xf32>
    %36 = math.exp %35 : vector<2x16x16xf32>
    %cst_11 = arith.constant dense<0.000000e+00> : vector<2x16xf32>
    %37 = vector.multi_reduction <add>, %36, %cst_11 [2] : vector<2x16x16xf32> to vector<2x16xf32>
    %38 = vector.shape_cast %37 : vector<2x16xf32> to vector<2x16x1xf32>
    %39 = vector.broadcast %38 : vector<2x16x1xf32> to vector<2x16x16xf32>
    %40 = arith.divf %36, %39 : vector<2x16x16xf32>
    "tpu.trace_start"() <{level = 10 : i32, message = "bnm,bmd->bnd"}> : () -> ()
    %cst_12 = arith.constant dense<0.000000e+00> : vector<2x16x8xf32>
    %41 = tpu.matmul %40, %30, %cst_12 {dimension_numbers = #tpu.dot_dimension_numbers<[2], [1], [1], [2], [0, 0, 0, 1, 1, 2], [0], [0]>} : vector<2x16x16xf32>, vector<2x16x8xf32>, vector<2x16x8xf32> -> vector<2x16x8xf32>
    "tpu.trace_stop"() : () -> ()
    %42 = vector.shape_cast %41 : vector<2x16x8xf32> to vector<32x8xf32>
    %43 = vector.extract_strided_slice %6 {offsets = [0, 16], sizes = [32, 8], strides = [1, 1]} : vector<32x96xf32> to vector<32x8xf32>
    %44 = vector.shape_cast %43 : vector<32x8xf32> to vector<2x16x8xf32>
    %45 = vector.extract_strided_slice %6 {offsets = [0, 48], sizes = [32, 8], strides = [1, 1]} : vector<32x96xf32> to vector<32x8xf32>
    %46 = vector.shape_cast %45 : vector<32x8xf32> to vector<2x16x8xf32>
    %47 = vector.extract_strided_slice %6 {offsets = [0, 80], sizes = [32, 8], strides = [1, 1]} : vector<32x96xf32> to vector<32x8xf32>
    %48 = vector.shape_cast %47 : vector<32x8xf32> to vector<2x16x8xf32>
    "tpu.trace_start"() <{level = 10 : i32, message = "bnd,bmd->bnm"}> : () -> ()
    %cst_13 = arith.constant dense<0.000000e+00> : vector<2x16x16xf32>
    %49 = tpu.matmul %44, %46, %cst_13 {dimension_numbers = #tpu.dot_dimension_numbers<[2], [2], [1], [1], [0, 0, 0, 1, 1, 1], [0], [0]>} : vector<2x16x8xf32>, vector<2x16x8xf32>, vector<2x16x16xf32> -> vector<2x16x16xf32>
    "tpu.trace_stop"() : () -> ()
    %cst_14 = arith.constant dense<0xFF800000> : vector<2x16xf32>
    %50 = vector.multi_reduction <maximumf>, %49, %cst_14 [2] : vector<2x16x16xf32> to vector<2x16xf32>
    %51 = vector.shape_cast %50 : vector<2x16xf32> to vector<2x16x1xf32>
    %52 = vector.broadcast %51 : vector<2x16x1xf32> to vector<2x16x16xf32>
    %53 = arith.subf %49, %52 : vector<2x16x16xf32>
    %54 = math.exp %53 : vector<2x16x16xf32>
    %cst_15 = arith.constant dense<0.000000e+00> : vector<2x16xf32>
    %55 = vector.multi_reduction <add>, %54, %cst_15 [2] : vector<2x16x16xf32> to vector<2x16xf32>
    %56 = vector.shape_cast %55 : vector<2x16xf32> to vector<2x16x1xf32>
    %57 = vector.broadcast %56 : vector<2x16x1xf32> to vector<2x16x16xf32>
    %58 = arith.divf %54, %57 : vector<2x16x16xf32>
    "tpu.trace_start"() <{level = 10 : i32, message = "bnm,bmd->bnd"}> : () -> ()
    %cst_16 = arith.constant dense<0.000000e+00> : vector<2x16x8xf32>
    %59 = tpu.matmul %58, %48, %cst_16 {dimension_numbers = #tpu.dot_dimension_numbers<[2], [1], [1], [2], [0, 0, 0, 1, 1, 2], [0], [0]>} : vector<2x16x16xf32>, vector<2x16x8xf32>, vector<2x16x8xf32> -> vector<2x16x8xf32>
    "tpu.trace_stop"() : () -> ()
    %60 = vector.shape_cast %59 : vector<2x16x8xf32> to vector<32x8xf32>
    %61 = vector.extract_strided_slice %6 {offsets = [0, 24], sizes = [32, 8], strides = [1, 1]} : vector<32x96xf32> to vector<32x8xf32>
    %62 = vector.shape_cast %61 : vector<32x8xf32> to vector<2x16x8xf32>
    %63 = vector.extract_strided_slice %6 {offsets = [0, 56], sizes = [32, 8], strides = [1, 1]} : vector<32x96xf32> to vector<32x8xf32>
    %64 = vector.shape_cast %63 : vector<32x8xf32> to vector<2x16x8xf32>
    %65 = vector.extract_strided_slice %6 {offsets = [0, 88], sizes = [32, 8], strides = [1, 1]} : vector<32x96xf32> to vector<32x8xf32>
    %66 = vector.shape_cast %65 : vector<32x8xf32> to vector<2x16x8xf32>
    "tpu.trace_start"() <{level = 10 : i32, message = "bnd,bmd->bnm"}> : () -> ()
    %cst_17 = arith.constant dense<0.000000e+00> : vector<2x16x16xf32>
    %67 = tpu.matmul %62, %64, %cst_17 {dimension_numbers = #tpu.dot_dimension_numbers<[2], [2], [1], [1], [0, 0, 0, 1, 1, 1], [0], [0]>} : vector<2x16x8xf32>, vector<2x16x8xf32>, vector<2x16x16xf32> -> vector<2x16x16xf32>
    "tpu.trace_stop"() : () -> ()
    %cst_18 = arith.constant dense<0xFF800000> : vector<2x16xf32>
    %68 = vector.multi_reduction <maximumf>, %67, %cst_18 [2] : vector<2x16x16xf32> to vector<2x16xf32>
    %69 = vector.shape_cast %68 : vector<2x16xf32> to vector<2x16x1xf32>
    %70 = vector.broadcast %69 : vector<2x16x1xf32> to vector<2x16x16xf32>
    %71 = arith.subf %67, %70 : vector<2x16x16xf32>
    %72 = math.exp %71 : vector<2x16x16xf32>
    %cst_19 = arith.constant dense<0.000000e+00> : vector<2x16xf32>
    %73 = vector.multi_reduction <add>, %72, %cst_19 [2] : vector<2x16x16xf32> to vector<2x16xf32>
    %74 = vector.shape_cast %73 : vector<2x16xf32> to vector<2x16x1xf32>
    %75 = vector.broadcast %74 : vector<2x16x1xf32> to vector<2x16x16xf32>
    %76 = arith.divf %72, %75 : vector<2x16x16xf32>
    "tpu.trace_start"() <{level = 10 : i32, message = "bnm,bmd->bnd"}> : () -> ()
    %cst_20 = arith.constant dense<0.000000e+00> : vector<2x16x8xf32>
    %77 = tpu.matmul %76, %66, %cst_20 {dimension_numbers = #tpu.dot_dimension_numbers<[2], [1], [1], [2], [0, 0, 0, 1, 1, 2], [0], [0]>} : vector<2x16x16xf32>, vector<2x16x8xf32>, vector<2x16x8xf32> -> vector<2x16x8xf32>
    "tpu.trace_stop"() : () -> ()
    %78 = vector.shape_cast %77 : vector<2x16x8xf32> to vector<32x8xf32>
    %79 = tpu.concatenate %24, %42, %60, %78 in 1 : vector<32x8xf32>, vector<32x8xf32>, vector<32x8xf32>, vector<32x8xf32> -> vector<32x32xf32>
    %80 = arith.truncf %79 : vector<32x32xf32> to vector<32x32xbf16>
    %c0_21 = arith.constant 0 : index
    %c0_22 = arith.constant 0 : index
    %81 = vector.load %arg4[%c0_21, %c0_22] : memref<32x32xbf16, #tpu.memory_space<vmem>>, vector<32x32xbf16>
    %cst_23 = arith.constant dense<0.000000e+00> : vector<32x32xf32>
    %82 = tpu.matmul %80, %81, %cst_23 {dimension_numbers = #tpu.dot_dimension_numbers<[1], [0], [0], [1], [0, 0, 1, 1], [], []>} : vector<32x32xbf16>, vector<32x32xbf16>, vector<32x32xf32> -> vector<32x32xf32>
    %c0_24 = arith.constant 0 : index
    %c0_25 = arith.constant 0 : index
    %83 = vector.load %arg5[%c0_24, %c0_25] : memref<1x32xf32, #tpu.memory_space<vmem>>, vector<1x32xf32>
    %84 = vector.broadcast %83 : vector<1x32xf32> to vector<32x32xf32>
    %85 = arith.addf %82, %84 : vector<32x32xf32>
    %c0_26 = arith.constant 0 : index
    %c0_27 = arith.constant 0 : index
    %86 = vector.load %arg6[%c0_26, %c0_27] : memref<32x32xf32, #tpu.memory_space<vmem>>, vector<32x32xf32>
    tpu.vector_store %arg6[%c0_26, %c0_27], %85 {strides = array<i32>} : memref<32x32xf32, #tpu.memory_space<vmem>>, vector<32x32xf32>,
    return
  }
  func.func @transform_0(%arg0: i32) -> (i32, i32) {
    %c0_i32 = arith.constant 0 : i32
    %c0_i32_0 = arith.constant 0 : i32
    %c0_i32_1 = arith.constant 0 : i32
    return %c0_i32, %c0_i32_0 : i32, i32
  }
  func.func @transform_1(%arg0: i32) -> (i32, i32) {
    %c0_i32 = arith.constant 0 : i32
    %c0_i32_0 = arith.constant 0 : i32
    %c0_i32_1 = arith.constant 0 : i32
    return %c0_i32, %c0_i32_0 : i32, i32
  }
  func.func @transform_2(%arg0: i32) -> (i32, i32) {
    %c0_i32 = arith.constant 0 : i32
    %c0_i32_0 = arith.constant 0 : i32
    %c0_i32_1 = arith.constant 0 : i32
    return %c0_i32, %c0_i32_0 : i32, i32
  }
  func.func @transform_3(%arg0: i32) -> (i32, i32) {
    %c0_i32 = arith.constant 0 : i32
    %c0_i32_0 = arith.constant 0 : i32
    %c0_i32_1 = arith.constant 0 : i32
    return %c0_i32, %c0_i32_0 : i32, i32
  }
  func.func @transform_4(%arg0: i32) -> (i32, i32) {
    %c0_i32 = arith.constant 0 : i32
    %c0_i32_0 = arith.constant 0 : i32
    %c0_i32_1 = arith.constant 0 : i32
    return %c0_i32, %c0_i32_0 : i32, i32
  }
  func.func @transform_5(%arg0: i32) -> (i32, i32) {
    %c0_i32 = arith.constant 0 : i32
    %c0_i32_0 = arith.constant 0 : i32
    %c0_i32_1 = arith.constant 0 : i32
    return %c0_i32, %c0_i32_0 : i32, i32
  }
}

</mosaic_0001>

<bundles_post_ra>
// kernel: attention_forward.1
= control target key start
LH: loop header
LB: loop body
LE: loop exit
PB: predicated region body
PF: predicated region fallthrough
CT: control target
= control target key end

     0   :  { %10 = vsyncpa [#allocation3], 0  ;;  %s2863_s0 = inlined_call_operand.hbm [shape: f32[32,32], index: 0, kind: input, shape index: {}]   ;;  %s2864_s1 = inlined_call_operand.hbm [shape: bf16[32,96], index: 1, kind: input, shape index: {}]   ;;  %s2865_s2 = inlined_call_operand.vmem [shape: f32[1,96], index: 2, kind: input, shape index: {}]   ;;  %s2866_s3 = inlined_call_operand.hbm [shape: bf16[32,32], index: 3, kind: input, shape index: {}]   ;;  %s2867_s4 = inlined_call_operand.vmem [shape: f32[1,32], index: 4, kind: input, shape index: {}]   ;;  %s2868_s5 = inlined_call_operand.hbm [shape: f32[32,32], index: 5, kind: output, shape index: {}]  }
   0x1   :  { %11 = vsyncpa [#allocation6], 0 }
   0x2   :  { %12 = vsyncpa [#allocation4], 0  ;;  %s2539_s18 = smov [#allocation5]   ;;  %s2445_s22 = scalar_lea.hbm %s2864_s1, 256 }
   0x3   :  { %s30_s19 = sshll.u32 %s2539_s18, 4  ;;  %p2446_p0 = scmp.ne.s32.totalorder %s2864_s1, %s2445_s22  ;;  %s31_s19 = int_to_ptr.vmem [resolvable:$true] %s30_s19 }
   0x4   :  { %p2449_p1 = scmp.lt.u32.totalorder %s2445_s22, %s2864_s1 }
   0x6   :  { %p2451_p2 = pnand %p2449_p1, %p2446_p0 }
   0x8   :  { %2454 = shalt.err (!%p2451_p2)
}
   0x9   :  { %s2455_s27 = scalar_lea.vmem %s31_s19, 256  ;;  %p2460_p4 = scmp.lt.s32.totalorder %s31_s19, %s31_s19 }
   0xa   :  { %p2456_p3 = scmp.ne.s32.totalorder %s31_s19, %s2455_s27  ;;  %p2461_p5 = scmp.lt.s32.totalorder %s2455_s27, %s2455_s27 }
   0xc   :  { %p2462_p6 = por %p2461_p5, %p2460_p4 }
   0xe   :  { %p2463_p7 = pnand %p2462_p6, %p2456_p3 }
  0x10   :  { %2466 = shalt.err (!%p2463_p7)
}
  0x11   :  { %s2540_s28 = smov 64   ;;  %s2541_s29 = smov 4  }
  0x12   :  { %36 = dma.hbm_to_vmem [thread:$0]  %s2864_s1, 256, %s31_s19, [#allocation6], %s2540_s28, %s2540_s28, %s2541_s29  }
  0x13   :  { %s2542_s7 = smov [#allocation2]   ;;  %s2467_s11 = scalar_lea.hbm %s2863_s0, 512 }
  0x14   :  { %s18_s8 = sshll.u32 %s2542_s7, 4  ;;  %p2468_p8 = scmp.ne.s32.totalorder %s2863_s0, %s2467_s11  ;;  %s19_s8 = int_to_ptr.vmem [resolvable:$true] %s18_s8 }
  0x15   :  { %p2471_p9 = scmp.lt.u32.totalorder %s2467_s11, %s2863_s0 }
  0x17   :  { %p2473_p10 = pnand %p2471_p9, %p2468_p8 }
  0x19   :  { %2476 = shalt.err (!%p2473_p10)
}
  0x1a   :  { %s2477_s16 = scalar_lea.vmem %s19_s8, 512  ;;  %p2482_p12 = scmp.lt.s32.totalorder %s19_s8, %s19_s8 }
  0x1b   :  { %p2478_p11 = scmp.ne.s32.totalorder %s19_s8, %s2477_s16  ;;  %p2483_p13 = scmp.lt.s32.totalorder %s2477_s16, %s2477_s16 }
  0x1d   :  { %p2484_p0 = por %p2483_p13, %p2482_p12 }
  0x1f   :  { %p2485_p1 = pnand %p2484_p0, %p2478_p11 }
  0x21   :  { %2488 = shalt.err (!%p2485_p1)
}
  0x22   :  { %s2543_s1 = smov 128   ;;  %s2544_s17 = smov 8  }
  0x23   :  { %24 = dma.hbm_to_vmem [thread:$0]  %s2863_s0, 512, %s19_s8, [#allocation3], %s2543_s1, %s2543_s1, %s2544_s17  }
  0x24   :  { %s2545_s20 = smov [#allocation7]   ;;  %s2489_s24 = scalar_lea.hbm %s2866_s3, 256 }
  0x25   :  { %s44_s21 = sshll.u32 %s2545_s20, 4  ;;  %p2490_p2 = scmp.ne.s32.totalorder %s2866_s3, %s2489_s24  ;;  %s45_s21 = int_to_ptr.vmem [resolvable:$true] %s44_s21 }
  0x26   :  { %p2493_p3 = scmp.lt.u32.totalorder %s2489_s24, %s2866_s3 }
  0x28   :  { %p2495_p4 = pnand %p2493_p3, %p2490_p2 }
  0x2a   :  { %2498 = shalt.err (!%p2495_p4)
}
  0x2b   :  { %s2499_s6 = scalar_lea.vmem %s45_s21, 256  ;;  %p2504_p6 = scmp.lt.s32.totalorder %s45_s21, %s45_s21 }
  0x2c   :  { %p2500_p5 = scmp.ne.s32.totalorder %s45_s21, %s2499_s6  ;;  %p2505_p7 = scmp.lt.s32.totalorder %s2499_s6, %s2499_s6 }
  0x2e   :  { %p2506_p8 = por %p2505_p7, %p2504_p6 }
  0x30   :  { %p2507_p9 = pnand %p2506_p8, %p2500_p5 }
  0x32   :  { %2510 = shalt.err (!%p2507_p9)
}
  0x33   :  { %50 = dma.hbm_to_vmem [thread:$0]  %s2866_s3, 256, %s45_s21, [#allocation6], %s2540_s28, %s2540_s28, %s2541_s29  }
  0x34   :  { %2533 = dma.done.wait [#allocation3], 512  }
  0x35   :  { %2534 = vsyncadd [#allocation3], 4294966784 }
  0x36   :  { %2535 = dma.done.wait [#allocation6], 512  }
  0x37   :  { %2536 = vsyncadd [#allocation6], 4294966784  ;;  %v2377_v0 = vld [vmem:[#allocation5] sm:$0xff]   ;;  %v2378_v1 = vld [vmem:[#allocation5 + $0x8] sm:$0xff]   ;;  %vm92_vm0 = vcmask 261120   ;;  %vm154_vm1 = vcmask 64512  }
  0x38   :  { %2039 = vmatprep.subr.bf16.mxu1 %v2377_v0  ;;  %v63_v2 = vld [vmem:[#allocation2] sm:$0xff]  ;;  %v64_v3 = vld [vmem:[#allocation2 + $0x8] sm:$0xff]  ;;  %v65_v4 = vld [vmem:[#allocation2 + $0x10] sm:$0xff]  ;;  %vm327_vm3 = vcmask 130048   ;;  %s2547_s8 = smov 88   ;;  %s2548_s9 = smov 120  }
  0x39   :  { %2040 = vmatpush3.bf16.msra.mxu1 %v2377_v0  ;;  %v67_v5 = vpack.c.bf16 %v64_v3, %v63_v2  ;;  %v66_v6 = vld [vmem:[#allocation2 + $0x18] sm:$0xff]  ;;  %v1909_v8 = vld [vmem:[%s2865_s2] ss:$0 sm:$0xff]  ;;  %s2546_s2 = smov 96   ;;  %vm2663_vm2 = vmpackc.low %vm154_vm1, %vm154_vm1  ;;  %s2550_s10 = smov 80   ;;  %vm1802_vm4 = vcmask 195584  }
  0x3a   :  { %2041 = vmatprep.subr.bf16.mxu1 %v2378_v1  ;;  %v68_v7 = vpack.c.bf16 %v66_v6, %v65_v4  ;;  %s2551_s11 = smov 112   ;;  %s2552_s12 = smov 48  }
  0x3b   :  { %2043 = vmatprep.mubr.msk.bf16.mxu1 %vm92_vm0, %v67_v5  ;;  %s2553_s13 = smov 72   ;;  %s2554_s14 = smov 104  }
  0x3c   :  { %s2555_s15 = smov 40   ;;  %s2556_s16 = smov 16  }
  0x3d   :  { %2042 = vmatpush3.bf16.msra.mxu1 %v2378_v1  ;;  %s2557_s18 = smov 24   ;;  %s2558_s21 = smov [#allocation8]  }
  0x3e   :  { %s1896_s22 = sshll.u32 %s2558_s21, 4  ;;  %s1897_s22 = int_to_ptr.vmem [resolvable:$true] %s1896_s22 }
  0x3f   :  { %p2516_p11 = scmp.lt.s32.totalorder %s1897_s22, %s1897_s22 }
  0x40   :  { %2044 = vmatmul.mubr.msk.bf16.vlgmr.msra.gmra.mrb[0].mxu1 %vm92_vm0, %v68_v7 }
 0x113   :  { %v2045_v9 = vpop.f32.mrb[0].mxu1 }
 0x114   :  { %v2639_v10 = vadd.f32 %v2045_v9, %v1909_v8  ;;  %v133_v11 = vpop.f32.mrb[1].mxu1 }
 0x115   :  { %v2641_v12 = vadd.f32 %v1909_v8, %v133_v11  ;;  %v2046_v13 = vpop.f32.mrb[2].mxu1 }
 0x116   :  { %v136_v14 = vpop.f32.mrb[3].mxu1  ;;  %2058 = vmatprep.mubr.msk.f32.mxu0 %vm154_vm1, %v2639_v10  ;;  %v2649_v16 = vadd.f32 %v2046_v13, %v1909_v8 }
 0x117   :  { %v2645_v15 = vadd.f32 %v1909_v8, %v136_v14  ;;  %2051 = vmatprep.mubr.msk.f32.mxu1 %vm154_vm1, %v2641_v12 }
 0x118   :  { %v2658_v18 = vpack.i.bf16 %v2649_v16, %v2639_v10 }
 0x119   :  { %v2653_v17 = vpack.i.bf16 %v2645_v15, %v2641_v12 }
 0x11b   :  { %2268 = vrot.lane.b32.xlu0 %v2653_v17, %s2546_s2 }
 0x11f   :  { %2273 = vrot.lane.b32.xlu0 %v2658_v18, %s2546_s2 }
 0x18d   :  { %v2269_v19 = vpop.permute.xlu0 %2268 }
 0x18e   :  { %v2271_v20 = vunpack.i.h.bf16 %v2269_v19  ;;  %v2270_v21 = vunpack.i.l.bf16 %v2269_v19 }
 0x190   :  { %v2167_v23 = vpack.c.bf16 %v2271_v20, %v2270_v21 }
 0x191   :  { %v2274_v24 = vpop.permute.xlu0 %2273 }
 0x192   :  { %v2276_v25 = vunpack.i.h.bf16 %v2274_v24  ;;  %v2275_v26 = vunpack.i.l.bf16 %v2274_v24  ;;  %2169 = vmatprep.subr.msk.bf16.mxu1 %vm2663_vm2, %v2167_v23 }
 0x193   :  { %2172 = vmatpush3.bf16.xpose.msk.msra.mxu1 %vm2663_vm2, %v2167_v23 }
 0x194   :  { %v2173_v27 = vpack.c.bf16 %v2276_v25, %v2275_v26 }
 0x196   :  { %2175 = vmatprep.subr.msk.bf16.mxu0 %vm2663_vm2, %v2173_v27 }
 0x197   :  { %2178 = vmatpush3.bf16.xpose.msk.msra.mxu0 %vm2663_vm2, %v2173_v27 }
 0x19a   :  { %2052 = vmatmul.mubr.msk.f32.vlgmr.msra.gmra.mrb[4].mxu1 %vm154_vm1, %v2645_v15 }
 0x19e   :  { %2059 = vmatmul.mubr.msk.f32.vlgmr.msra.gmra.mrb[0].mxu0 %vm154_vm1, %v2649_v16 }
 0x26d   :  { %v2053_v28 = vpop.f32.mrb[4].mxu1 }
 0x26e   :  { %v229_v29 = vpop.f32.mrb[5].mxu1  ;;  %v331_v34 = vsel %vm327_vm3, %v2053_v28, -inf }
 0x26f   :  { %v328_v30 = vsel %vm327_vm3, %v229_v29, -inf }
 0x270   :  { %329 = vmax.xlane.f32.xlu1 %v328_v30 }
 0x271   :  { %v2060_v31 = vpop.f32.mrb[0].mxu0 }
 0x272   :  { %v318_v32 = vpop.f32.mrb[1].mxu0  ;;  %v337_v35 = vsel %vm327_vm3, %v2060_v31, -inf }
 0x273   :  { %v334_v33 = vsel %vm327_vm3, %v318_v32, -inf }
 0x274   :  { %335 = vmax.xlane.f32.xlu0 %v334_v33  ;;  %332 = vmax.xlane.f32.xlu1 %v331_v34 }
 0x278   :  { %338 = vmax.xlane.f32.xlu1 %v337_v35 }
 0x289   :  { %2278 = vrot.lane.b32.xlu1 %v2653_v17, %s2540_s28 }
 0x28a   :  { %2283 = vrot.lane.b32.xlu0 %v2658_v18, %s2540_s28  ;;  %s2549_s28 = smov 56  }
 0x28d   :  { %2288 = vrot.lane.b32.xlu1 %v2653_v17, %s2547_s8 }
 0x28e   :  { %637 = vrot.lane.b32.xlu0 %v2639_v10, %s2548_s9 }
 0x291   :  { %2293 = vrot.lane.b32.xlu1 %v2658_v18, %s2547_s8 }
 0x2fd   :  { %v330_v36 = vpop.xlane.xlu1 %329 }
 0x2fe   :  { %v340_v51 = vsub.f32 %v229_v29, %v330_v36 }
 0x300   :  { %v344_v58 = vmul.f32 1.442695, %v340_v51 }
 0x301   :  { %v336_v37 = vpop.xlane.xlu0 %335  ;;  %v333_v38 = vpop.xlane.xlu1 %332 }
 0x302   :  { %v341_v39 = vsub.f32 %v2053_v28, %v333_v38  ;;  %v342_v43 = vsub.f32 %v318_v32, %v336_v37 }
 0x304   :  { %v346_v44 = vmul.f32 1.442695, %v341_v39  ;;  %v348_v52 = vmul.f32 1.442695, %v342_v43 }
 0x305   :  { %v339_v40 = vpop.xlane.xlu1 %338  ;;  %v2284_v41 = vpop.permute.xlu0 %2283 }
 0x306   :  { %v343_v42 = vsub.f32 %v2060_v31, %v339_v40  ;;  %v2286_v46 = vunpack.i.h.bf16 %v2284_v41  ;;  %v2285_v48 = vunpack.i.l.bf16 %v2284_v41 }
 0x308   :  { %v350_v45 = vmul.f32 1.442695, %v343_v42  ;;  %v2183_v55 = vpack.c.bf16 %v2286_v46, %v2285_v48 }
 0x309   :  { %v2279_v47 = vpop.permute.xlu1 %2278  ;;  %v638_v29 = vpop.permute.xlu0 %637 }
 0x30a   :  { %2381 = vpow2.f32 %v350_v45  ;;  %v2281_v49 = vunpack.i.h.bf16 %v2279_v47  ;;  %v2280_v50 = vunpack.i.l.bf16 %v2279_v47 }
 0x30b   :  { %2383 = vpow2.f32 %v346_v44 }
 0x30c   :  { %v2179_v53 = vpack.c.bf16 %v2281_v49, %v2280_v50  ;;  %2385 = vpow2.f32 %v348_v52 }
 0x30d   :  { %v2289_v54 = vpop.permute.xlu1 %2288  ;;  %2387 = vpow2.f32 %v344_v58 }
 0x30e   :  { %v2291_v56 = vunpack.i.h.bf16 %v2289_v54  ;;  %v2290_v57 = vunpack.i.l.bf16 %v2289_v54  ;;  %2180 = vmatprep.subr.bf16.mxu1 %v2179_v53 }
 0x30f   :  { %2182 = vmatpush3.bf16.msra.mxu1 %v2179_v53 }
 0x310   :  { %v2187_v59 = vpack.c.bf16 %v2291_v56, %v2290_v57  ;;  %2184 = vmatprep.subr.bf16.mxu1 %v2183_v55 }
 0x311   :  { %v2294_v4 = vpop.permute.xlu1 %2293 }
 0x312   :  { %2189 = vmatprep.subr.msk.bf16.mxu0 %vm2663_vm2, %v2187_v59  ;;  %v2296_v20 = vunpack.i.h.bf16 %v2294_v4  ;;  %v2295_v21 = vunpack.i.l.bf16 %v2294_v4 }
 0x313   :  { %2192 = vmatpush3.bf16.xpose.msk.msra.mxu0 %vm2663_vm2, %v2187_v59 }
 0x314   :  { %v2382_v60 = vpop.eup %2381  ;;  %v2193_v27 = vpack.c.bf16 %v2296_v20, %v2295_v21 }
 0x315   :  { %v361_v61 = vsel %vm327_vm3, %v2382_v60, 0.0  ;;  %v2384_v62 = vpop.eup %2383 }
 0x316   :  { %362 = vadd.xlane.f32.xlu1 %v361_v61  ;;  %v355_v63 = vsel %vm327_vm3, %v2384_v62, 0.0  ;;  %v2386_v0 = vpop.eup %2385 }
 0x317   :  { %v358_v1 = vsel %vm327_vm3, %v2386_v0, 0.0  ;;  %v2388_v2 = vpop.eup %2387 }
 0x318   :  { %v352_v3 = vsel %vm327_vm3, %v2388_v2, 0.0 }
 0x31a   :  { %356 = vadd.xlane.f32.xlu1 %v355_v63 }
 0x31e   :  { %359 = vadd.xlane.f32.xlu1 %v358_v1 }
 0x322   :  { %353 = vadd.xlane.f32.xlu1 %v352_v3 }
 0x333   :  { %546 = vrot.lane.b32.xlu1 %v2641_v12, %s2548_s9 }
 0x337   :  { %548 = vrot.lane.b32.xlu1 %v2645_v15, %s2548_s9 }
 0x33b   :  { %639 = vrot.lane.b32.xlu1 %v2649_v16, %s2548_s9 }
 0x3a3   :  { %v363_v5 = vpop.xlane.xlu1 %362 }
 0x3a7   :  { %v357_v6 = vpop.xlane.xlu1 %356 }
 0x3a8   :  { %2389 = vrcp.f32 %v357_v6 }
 0x3ab   :  { %v360_v7 = vpop.xlane.xlu1 %359 }
 0x3ac   :  { %2391 = vrcp.f32 %v360_v7 }
 0x3af   :  { %v354_v8 = vpop.xlane.xlu1 %353 }
 0x3b0   :  { %2393 = vrcp.f32 %v354_v8 }
 0x3b1   :  { %2395 = vrcp.f32 %v363_v5 }
 0x3b2   :  { %v2390_v13 = vpop.eup %2389 }
 0x3b3   :  { %v547_v9 = vpop.permute.xlu1 %546  ;;  %v367_v24 = vmul.f32 %v2390_v13, %v2384_v62 }
 0x3b4   :  { %2079 = vmatprep.mubr.msk.f32.mxu0 %vm154_vm1, %v547_v9 }
 0x3b6   :  { %v2392_v14 = vpop.eup %2391 }
 0x3b7   :  { %v549_v11 = vpop.permute.xlu1 %548  ;;  %v369_v26 = vmul.f32 %v2392_v14, %v2386_v0 }
 0x3b8   :  { %2080 = vmatmul.mubr.msk.f32.vlgmr.msra.gmra.mrb[2].mxu0 %vm154_vm1, %v549_v11 }
 0x3ba   :  { %v2394_v19 = vpop.eup %2393 }
 0x3bb   :  { %v365_v23 = vmul.f32 %v2394_v19, %v2388_v2  ;;  %v2396_v25 = vpop.eup %2395  ;;  %v640_v30 = vpop.permute.xlu1 %639 }
 0x3bc   :  { %v371_v28 = vmul.f32 %v2396_v25, %v2382_v60 }
 0x3bd   :  { %2065 = vmatprep.mubr.msk.f32.mxu1 %vm327_vm3, %v365_v23 }
 0x3be   :  { %2066 = vmatmul.mubr.msk.f32.vlgmr.msra.gmra.mrb[6].mxu1 %vm327_vm3, %v367_v24 }
 0x3bf   :  { %2186 = vmatpush3.bf16.msra.mxu1 %v2183_v55  ;;  %2072 = vmatprep.mubr.msk.f32.mxu1 %vm327_vm3, %v369_v26 }
 0x3c0   :  { %2195 = vmatprep.subr.msk.bf16.mxu1 %vm2663_vm2, %v2193_v27 }
 0x3c2   :  { %2073 = vmatmul.mubr.msk.f32.vlgmr.msra.gmra.mrb[8].mxu1 %vm327_vm3, %v371_v28 }
 0x3c3   :  { %2086 = vmatprep.mubr.msk.f32.mxu1 %vm154_vm1, %v638_v29 }
 0x3c8   :  { %2198 = vmatpush3.bf16.xpose.msk.msra.mxu1 %vm2663_vm2, %v2193_v27 }
 0x3cf   :  { %2087 = vmatmul.mubr.msk.f32.vlgmr.msra.gmra.mrb[10].mxu1 %vm154_vm1, %v640_v30 }
 0x48b   :  { %v2081_v31 = vpop.f32.mrb[2].mxu0 }
 0x48c   :  { %v628_v32 = vpop.f32.mrb[3].mxu0  ;;  %v731_v33 = vsel %vm327_vm3, %v2081_v31, -inf }
 0x48d   :  { %732 = vmax.xlane.f32.xlu1 %v731_v33  ;;  %v728_v34 = vsel %vm327_vm3, %v628_v32, -inf }
 0x48e   :  { %729 = vmax.xlane.f32.xlu0 %v728_v34 }
 0x491   :  { %v2719_v35 = vpop.f32.mrb[6].mxu1 }
 0x492   :  { %v2721_v36 = vpop.f32.mrb[7].mxu1 }
 0x495   :  { %v2723_v37 = vpop.f32.mrb[8].mxu1 }
 0x496   :  { %v2725_v38 = vpop.f32.mrb[9].mxu1 }
 0x4a2   :  { %v2088_v39 = vpop.f32.mrb[10].mxu1 }
 0x4a3   :  { %v719_v40 = vpop.f32.mrb[11].mxu1  ;;  %v737_v42 = vsel %vm327_vm3, %v2088_v39, -inf }
 0x4a4   :  { %v734_v41 = vsel %vm327_vm3, %v719_v40, -inf }
 0x4a5   :  { %735 = vmax.xlane.f32.xlu0 %v734_v41 }
 0x4a9   :  { %738 = vmax.xlane.f32.xlu0 %v737_v42 }
 0x51a   :  { %v733_v43 = vpop.xlane.xlu1 %732 }
 0x51b   :  { %v741_v44 = vsub.f32 %v2081_v31, %v733_v43  ;;  %v730_v45 = vpop.xlane.xlu0 %729 }
 0x51c   :  { %v740_v46 = vsub.f32 %v628_v32, %v730_v45 }
 0x51d   :  { %v746_v47 = vmul.f32 1.442695, %v741_v44 }
 0x51e   :  { %v744_v48 = vmul.f32 1.442695, %v740_v46 }
 0x51f   :  { %2397 = vpow2.f32 %v746_v47 }
 0x520   :  { %2399 = vpow2.f32 %v744_v48 }
 0x529   :  { %v2398_v49 = vpop.eup %2397 }
 0x52a   :  { %v2400_v50 = vpop.eup %2399  ;;  %v755_v51 = vsel %vm327_vm3, %v2398_v49, 0.0 }
 0x52b   :  { %756 = vadd.xlane.f32.xlu0 %v755_v51  ;;  %v752_v52 = vsel %vm327_vm3, %v2400_v50, 0.0 }
 0x52c   :  { %753 = vadd.xlane.f32.xlu1 %v752_v52 }
 0x532   :  { %v736_v53 = vpop.xlane.xlu0 %735 }
 0x533   :  { %v742_v57 = vsub.f32 %v719_v40, %v736_v53 }
 0x535   :  { %v748_v58 = vmul.f32 1.442695, %v742_v57 }
 0x536   :  { %v739_v54 = vpop.xlane.xlu0 %738 }
 0x537   :  { %v743_v55 = vsub.f32 %v2088_v39, %v739_v54 }
 0x539   :  { %v750_v56 = vmul.f32 1.442695, %v743_v55 }
 0x53b   :  { %2401 = vpow2.f32 %v750_v56 }
 0x53c   :  { %2403 = vpow2.f32 %v748_v58 }
 0x53d   :  { %2298 = vrot.lane.b32.xlu1 %v2653_v17, %s2549_s28 }
 0x541   :  { %2308 = vrot.lane.b32.xlu1 %v2653_v17, %s2550_s10  ;;  %2303 = vrot.lane.b32.xlu0 %v2658_v18, %s2549_s28 }
 0x545   :  { %2313 = vrot.lane.b32.xlu1 %v2658_v18, %s2550_s10  ;;  %v2402_v59 = vpop.eup %2401 }
 0x546   :  { %v761_v60 = vsel %vm327_vm3, %v2402_v59, 0.0  ;;  %v2404_v61 = vpop.eup %2403 }
 0x547   :  { %v758_v62 = vsel %vm327_vm3, %v2404_v61, 0.0 }
 0x549   :  { %948 = vrot.lane.b32.xlu1 %v2645_v15, %s2551_s11 }
 0x560   :  { %762 = vadd.xlane.f32.xlu0 %v761_v60 }
 0x56d   :  { %759 = vadd.xlane.f32.xlu1 %v758_v62 }
 0x576   :  { %946 = vrot.lane.b32.xlu0 %v2641_v12, %s2551_s11 }
 0x57a   :  { %1037 = vrot.lane.b32.xlu0 %v2639_v10, %s2551_s11 }
 0x57e   :  { %1039 = vrot.lane.b32.xlu1 %v2649_v16, %s2551_s11 }
 0x5b8   :  { %v757_v63 = vpop.xlane.xlu0 %756 }
 0x5b9   :  { %2405 = vrcp.f32 %v757_v63  ;;  %v754_v0 = vpop.xlane.xlu1 %753 }
 0x5ba   :  { %2407 = vrcp.f32 %v754_v0 }
 0x5bc   :  { %v2304_v1 = vpop.permute.xlu0 %2303 }
 0x5bd   :  { %v2306_v2 = vunpack.i.h.bf16 %v2304_v1  ;;  %v2305_v3 = vunpack.i.l.bf16 %v2304_v1  ;;  %v2299_v4 = vpop.permute.xlu1 %2298 }
 0x5be   :  { %v2301_v5 = vunpack.i.h.bf16 %v2299_v4  ;;  %v2300_v6 = vunpack.i.l.bf16 %v2299_v4 }
 0x5bf   :  { %v2203_v7 = vpack.c.bf16 %v2306_v2, %v2305_v3 }
 0x5c0   :  { %v2199_v8 = vpack.c.bf16 %v2301_v5, %v2300_v6 }
 0x5c1   :  { %v2309_v9 = vpop.permute.xlu1 %2308  ;;  %2204 = vmatprep.subr.bf16.mxu1 %v2203_v7 }
 0x5c2   :  { %v2311_v11 = vunpack.i.h.bf16 %v2309_v9  ;;  %v2310_v13 = vunpack.i.l.bf16 %v2309_v9  ;;  %2200 = vmatprep.subr.bf16.mxu0 %v2199_v8  ;;  %2206 = vmatpush3.bf16.msra.mxu1 %v2203_v7 }
 0x5c3   :  { %v2406_v14 = vpop.eup %2405  ;;  %2202 = vmatpush3.bf16.msra.mxu0 %v2199_v8 }
 0x5c4   :  { %v2408_v19 = vpop.eup %2407  ;;  %v2207_v20 = vpack.c.bf16 %v2311_v11, %v2310_v13  ;;  %v767_v24 = vmul.f32 %v2406_v14, %v2398_v49 }
 0x5c5   :  { %v2314_v21 = vpop.permute.xlu1 %2313  ;;  %v765_v23 = vmul.f32 %v2408_v19, %v2400_v50 }
 0x5c6   :  { %v2316_v25 = vunpack.i.h.bf16 %v2314_v21  ;;  %v2315_v26 = vunpack.i.l.bf16 %v2314_v21  ;;  %2209 = vmatprep.subr.msk.bf16.mxu0 %vm2663_vm2, %v2207_v20 }
 0x5c7   :  { %2093 = vmatprep.mubr.msk.f32.mxu0 %vm327_vm3, %v765_v23 }
 0x5c8   :  { %v2213_v27 = vpack.c.bf16 %v2316_v25, %v2315_v26  ;;  %2094 = vmatmul.mubr.msk.f32.vlgmr.msra.gmra.mrb[4].mxu0 %vm327_vm3, %v767_v24 }
 0x5c9   :  { %v949_v30 = vpop.permute.xlu1 %948 }
 0x5ca   :  { %2215 = vmatprep.subr.msk.bf16.mxu1 %vm2663_vm2, %v2213_v27 }
 0x5cc   :  { %2212 = vmatpush3.bf16.xpose.msk.msra.mxu0 %vm2663_vm2, %v2207_v20 }
 0x5ed   :  { %v763_v28 = vpop.xlane.xlu0 %762 }
 0x5ee   :  { %2409 = vrcp.f32 %v763_v28 }
 0x5f1   :  { %v947_v29 = vpop.permute.xlu0 %946 }
 0x5f2   :  { %2107 = vmatprep.mubr.msk.f32.mxu0 %vm154_vm1, %v947_v29 }
 0x5f3   :  { %2108 = vmatmul.mubr.msk.f32.vlgmr.msra.gmra.mrb[6].mxu0 %vm154_vm1, %v949_v30 }
 0x5f5   :  { %v1038_v40 = vpop.permute.xlu0 %1037 }
 0x5f8   :  { %v2410_v32 = vpop.eup %2409 }
 0x5f9   :  { %v771_v39 = vmul.f32 %v2410_v32, %v2402_v59 }
 0x5fa   :  { %v760_v31 = vpop.xlane.xlu1 %759 }
 0x5fb   :  { %2411 = vrcp.f32 %v760_v31 }
 0x5fe   :  { %v1040_v41 = vpop.permute.xlu1 %1039 }
 0x605   :  { %v2412_v33 = vpop.eup %2411 }
 0x606   :  { %v769_v34 = vmul.f32 %v2412_v33, %v2404_v61 }
 0x608   :  { %2100 = vmatprep.mubr.msk.f32.mxu1 %vm327_vm3, %v769_v34 }
 0x609   :  { %2101 = vmatmul.mubr.msk.f32.vlgmr.msra.gmra.mrb[12].mxu1 %vm327_vm3, %v771_v39 }
 0x60a   :  { %2218 = vmatpush3.bf16.xpose.msk.msra.mxu1 %vm2663_vm2, %v2213_v27  ;;  %2114 = vmatprep.mubr.msk.f32.mxu1 %vm154_vm1, %v1038_v40 }
 0x611   :  { %2115 = vmatmul.mubr.msk.f32.vlgmr.msra.gmra.mrb[14].mxu1 %vm154_vm1, %v1040_v41 }
 0x69b   :  { %v2757_v42 = vpop.f32.mrb[4].mxu0 }
 0x69c   :  { %v2759_v43 = vpop.f32.mrb[5].mxu0 }
 0x69d   :  { %v2347_v44 = vpack.i.bf16 %v2757_v42, %v2759_v43 }
 0x6c6   :  { %v2109_v45 = vpop.f32.mrb[6].mxu0 }
 0x6c7   :  { %v1028_v46 = vpop.f32.mrb[7].mxu0  ;;  %v1131_v47 = vsel %vm327_vm3, %v2109_v45, -inf }
 0x6c8   :  { %1132 = vmax.xlane.f32.xlu1 %v1131_v47  ;;  %v1128_v48 = vsel %vm327_vm3, %v1028_v46, -inf }
 0x6c9   :  { %1129 = vmax.xlane.f32.xlu0 %v1128_v48 }
 0x6dc   :  { %v2765_v49 = vpop.f32.mrb[12].mxu1 }
 0x6dd   :  { %v2767_v50 = vpop.f32.mrb[13].mxu1 }
 0x6de   :  { %v2352_v51 = vpack.i.bf16 %v2765_v49, %v2767_v50 }
 0x6e4   :  { %v2116_v52 = vpop.f32.mrb[14].mxu1 }
 0x6e5   :  { %v1119_v53 = vpop.f32.mrb[15].mxu1  ;;  %v1137_v55 = vsel %vm327_vm3, %v2116_v52, -inf }
 0x6e6   :  { %v1134_v54 = vsel %vm327_vm3, %v1119_v53, -inf }
 0x6e7   :  { %1135 = vmax.xlane.f32.xlu0 %v1134_v54 }
 0x6eb   :  { %1138 = vmax.xlane.f32.xlu0 %v1137_v55 }
 0x755   :  { %v1133_v56 = vpop.xlane.xlu1 %1132 }
 0x756   :  { %v1141_v57 = vsub.f32 %v2109_v45, %v1133_v56  ;;  %v1130_v58 = vpop.xlane.xlu0 %1129 }
 0x757   :  { %v1140_v59 = vsub.f32 %v1028_v46, %v1130_v58 }
 0x758   :  { %v1146_v60 = vmul.f32 1.442695, %v1141_v57 }
 0x759   :  { %v1144_v61 = vmul.f32 1.442695, %v1140_v59 }
 0x75a   :  { %2413 = vpow2.f32 %v1146_v60 }
 0x75b   :  { %2415 = vpow2.f32 %v1144_v61 }
 0x764   :  { %v2414_v62 = vpop.eup %2413 }
 0x765   :  { %v2416_v63 = vpop.eup %2415  ;;  %v1155_v0 = vsel %vm327_vm3, %v2414_v62, 0.0 }
 0x766   :  { %1156 = vadd.xlane.f32.xlu0 %v1155_v0  ;;  %v1152_v1 = vsel %vm327_vm3, %v2416_v63, 0.0 }
 0x767   :  { %1153 = vadd.xlane.f32.xlu1 %v1152_v1 }
 0x774   :  { %v1136_v2 = vpop.xlane.xlu0 %1135 }
 0x775   :  { %v1142_v6 = vsub.f32 %v1119_v53, %v1136_v2 }
 0x777   :  { %v1148_v7 = vmul.f32 1.442695, %v1142_v6 }
 0x778   :  { %2318 = vrot.lane.b32.xlu1 %v2653_v17, %s2552_s12  ;;  %v1139_v3 = vpop.xlane.xlu0 %1138 }
 0x779   :  { %v1143_v4 = vsub.f32 %v2116_v52, %v1139_v3 }
 0x77b   :  { %v1150_v5 = vmul.f32 1.442695, %v1143_v4 }
 0x77c   :  { %2328 = vrot.lane.b32.xlu1 %v2653_v17, %s2553_s13  ;;  %2323 = vrot.lane.b32.xlu0 %v2658_v18, %s2552_s12 }
 0x77d   :  { %2417 = vpow2.f32 %v1150_v5 }
 0x77e   :  { %2419 = vpow2.f32 %v1148_v7 }
 0x780   :  { %2333 = vrot.lane.b32.xlu1 %v2658_v18, %s2553_s13 }
 0x784   :  { %1348 = vrot.lane.b32.xlu1 %v2645_v15, %s2554_s14 }
 0x787   :  { %v2418_v8 = vpop.eup %2417 }
 0x788   :  { %v1161_v9 = vsel %vm327_vm3, %v2418_v8, 0.0  ;;  %v2420_v11 = vpop.eup %2419 }
 0x789   :  { %v1158_v13 = vsel %vm327_vm3, %v2420_v11, 0.0 }
 0x79b   :  { %1162 = vadd.xlane.f32.xlu0 %v1161_v9 }
 0x7a8   :  { %1159 = vadd.xlane.f32.xlu1 %v1158_v13 }
 0x7b1   :  { %1346 = vrot.lane.b32.xlu0 %v2641_v12, %s2554_s14 }
 0x7b5   :  { %1437 = vrot.lane.b32.xlu0 %v2639_v10, %s2554_s14 }
 0x7b9   :  { %1439 = vrot.lane.b32.xlu1 %v2649_v16, %s2554_s14 }
 0x7f3   :  { %v1157_v15 = vpop.xlane.xlu0 %1156 }
 0x7f4   :  { %2421 = vrcp.f32 %v1157_v15  ;;  %v1154_v14 = vpop.xlane.xlu1 %1153 }
 0x7f5   :  { %2423 = vrcp.f32 %v1154_v14 }
 0x7f7   :  { %v2324_v19 = vpop.permute.xlu0 %2323 }
 0x7f8   :  { %v2326_v20 = vunpack.i.h.bf16 %v2324_v19  ;;  %v2325_v21 = vunpack.i.l.bf16 %v2324_v19  ;;  %v2319_v23 = vpop.permute.xlu1 %2318 }
 0x7f9   :  { %v2321_v24 = vunpack.i.h.bf16 %v2319_v23  ;;  %v2320_v25 = vunpack.i.l.bf16 %v2319_v23 }
 0x7fa   :  { %v2223_v26 = vpack.c.bf16 %v2326_v20, %v2325_v21 }
 0x7fb   :  { %v2219_v27 = vpack.c.bf16 %v2321_v24, %v2320_v25 }
 0x7fc   :  { %v2329_v28 = vpop.permute.xlu1 %2328  ;;  %2224 = vmatprep.subr.bf16.mxu1 %v2223_v26 }
 0x7fd   :  { %v2331_v29 = vunpack.i.h.bf16 %v2329_v28  ;;  %v2330_v12 = vunpack.i.l.bf16 %v2329_v28  ;;  %2220 = vmatprep.subr.bf16.mxu0 %v2219_v27  ;;  %2226 = vmatpush3.bf16.msra.mxu1 %v2223_v26 }
 0x7fe   :  { %v2422_v10 = vpop.eup %2421  ;;  %2222 = vmatpush3.bf16.msra.mxu0 %v2219_v27 }
 0x7ff   :  { %v2424_v16 = vpop.eup %2423  ;;  %v2227_v30 = vpack.c.bf16 %v2331_v29, %v2330_v12  ;;  %v1167_v33 = vmul.f32 %v2422_v10, %v2414_v62 }
 0x800   :  { %v2334_v31 = vpop.permute.xlu1 %2333  ;;  %v1165_v32 = vmul.f32 %v2424_v16, %v2416_v63 }
 0x801   :  { %v2336_v34 = vunpack.i.h.bf16 %v2334_v31  ;;  %v2335_v39 = vunpack.i.l.bf16 %v2334_v31  ;;  %2229 = vmatprep.subr.msk.bf16.mxu0 %vm2663_vm2, %v2227_v30 }
 0x802   :  { %2121 = vmatprep.mubr.msk.f32.mxu0 %vm327_vm3, %v1165_v32 }
 0x803   :  { %v2233_v40 = vpack.c.bf16 %v2336_v34, %v2335_v39  ;;  %2122 = vmatmul.mubr.msk.f32.vlgmr.msra.gmra.mrb[8].mxu0 %vm327_vm3, %v1167_v33 }
 0x804   :  { %v1349_v46 = vpop.permute.xlu1 %1348 }
 0x805   :  { %2235 = vmatprep.subr.msk.bf16.mxu1 %vm2663_vm2, %v2233_v40 }
 0x807   :  { %2232 = vmatpush3.bf16.xpose.msk.msra.mxu0 %vm2663_vm2, %v2227_v30 }
 0x828   :  { %v1163_v41 = vpop.xlane.xlu0 %1162 }
 0x829   :  { %2425 = vrcp.f32 %v1163_v41 }
 0x82c   :  { %v1347_v45 = vpop.permute.xlu0 %1346 }
 0x82d   :  { %2135 = vmatprep.mubr.msk.f32.mxu0 %vm154_vm1, %v1347_v45 }
 0x82e   :  { %2136 = vmatmul.mubr.msk.f32.vlgmr.msra.gmra.mrb[10].mxu0 %vm154_vm1, %v1349_v46 }
 0x830   :  { %v1438_v55 = vpop.permute.xlu0 %1437 }
 0x833   :  { %v2426_v48 = vpop.eup %2425 }
 0x834   :  { %v1171_v54 = vmul.f32 %v2426_v48, %v2418_v8  ;;  %v2379_v48 = vld [vmem:[#allocation7] sm:$0xff]  }
 0x835   :  { %v1160_v47 = vpop.xlane.xlu1 %1159 }
 0x836   :  { %2427 = vrcp.f32 %v1160_v47 }
 0x839   :  { %v1440_v56 = vpop.permute.xlu1 %1439 }
 0x840   :  { %v2428_v52 = vpop.eup %2427 }
 0x841   :  { %v1169_v53 = vmul.f32 %v2428_v52, %v2420_v11  ;;  %v2380_v52 = vld [vmem:[#allocation7 + $0x8] sm:$0xff]  }
 0x843   :  { %2128 = vmatprep.mubr.msk.f32.mxu1 %vm327_vm3, %v1169_v53 }
 0x844   :  { %2129 = vmatmul.mubr.msk.f32.vlgmr.msra.gmra.mrb[16].mxu1 %vm327_vm3, %v1171_v54 }
 0x845   :  { %2238 = vmatpush3.bf16.xpose.msk.msra.mxu1 %vm2663_vm2, %v2233_v40  ;;  %2142 = vmatprep.mubr.msk.f32.mxu1 %vm154_vm1, %v1438_v55 }
 0x84c   :  { %2143 = vmatmul.mubr.msk.f32.vlgmr.msra.gmra.mrb[18].mxu1 %vm154_vm1, %v1440_v56 }
 0x8d6   :  { %v2123_v57 = vpop.f32.mrb[8].mxu0 }
 0x8d7   :  { %v1250_v58 = vpop.f32.mrb[9].mxu0 }
 0x8d8   :  { %v2357_v59 = vpack.i.bf16 %v2123_v57, %v1250_v58 }
 0x901   :  { %v2137_v60 = vpop.f32.mrb[10].mxu0 }
 0x902   :  { %v1428_v61 = vpop.f32.mrb[11].mxu0  ;;  %v1531_v62 = vsel %vm327_vm3, %v2137_v60, -inf }
 0x903   :  { %1532 = vmax.xlane.f32.xlu1 %v1531_v62  ;;  %v1528_v63 = vsel %vm327_vm3, %v1428_v61, -inf }
 0x904   :  { %1529 = vmax.xlane.f32.xlu0 %v1528_v63 }
 0x917   :  { %v2130_v0 = vpop.f32.mrb[16].mxu1 }
 0x918   :  { %v1337_v1 = vpop.f32.mrb[17].mxu1 }
 0x919   :  { %v2362_v22 = vpack.i.bf16 %v2130_v0, %v1337_v1 }
 0x91f   :  { %v2144_v2 = vpop.f32.mrb[18].mxu1 }
 0x920   :  { %v1519_v3 = vpop.f32.mrb[19].mxu1  ;;  %v1537_v5 = vsel %vm327_vm3, %v2144_v2, -inf }
 0x921   :  { %v1534_v4 = vsel %vm327_vm3, %v1519_v3, -inf }
 0x922   :  { %1535 = vmax.xlane.f32.xlu0 %v1534_v4 }
 0x926   :  { %1538 = vmax.xlane.f32.xlu0 %v1537_v5 }
 0x990   :  { %v1533_v6 = vpop.xlane.xlu1 %1532 }
 0x991   :  { %v1541_v7 = vsub.f32 %v2137_v60, %v1533_v6  ;;  %v1530_v8 = vpop.xlane.xlu0 %1529 }
 0x992   :  { %v1540_v9 = vsub.f32 %v1428_v61, %v1530_v8 }
 0x993   :  { %v1546_v11 = vmul.f32 1.442695, %v1541_v7 }
 0x994   :  { %v1544_v13 = vmul.f32 1.442695, %v1540_v9 }
 0x995   :  { %2429 = vpow2.f32 %v1546_v11 }
 0x996   :  { %2431 = vpow2.f32 %v1544_v13 }
 0x99f   :  { %v2430_v15 = vpop.eup %2429 }
 0x9a0   :  { %v2432_v14 = vpop.eup %2431  ;;  %v1555_v19 = vsel %vm327_vm3, %v2430_v15, 0.0 }
 0x9a1   :  { %1556 = vadd.xlane.f32.xlu0 %v1555_v19  ;;  %v1552_v20 = vsel %vm327_vm3, %v2432_v14, 0.0 }
 0x9a2   :  { %1553 = vadd.xlane.f32.xlu1 %v1552_v20 }
 0x9af   :  { %v1536_v21 = vpop.xlane.xlu0 %1535 }
 0x9b0   :  { %v1542_v23 = vsub.f32 %v1519_v3, %v1536_v21 }
 0x9b2   :  { %v1548_v24 = vmul.f32 1.442695, %v1542_v23 }
 0x9b3   :  { %v1539_v25 = vpop.xlane.xlu0 %1538 }
 0x9b4   :  { %2433 = vpow2.f32 %v1548_v24  ;;  %v1543_v26 = vsub.f32 %v2144_v2, %v1539_v25 }
 0x9b6   :  { %v1550_v27 = vmul.f32 1.442695, %v1543_v26 }
 0x9b8   :  { %2435 = vpow2.f32 %v1550_v27 }
 0x9be   :  { %v2434_v28 = vpop.eup %2433 }
 0x9bf   :  { %v1558_v29 = vsel %vm327_vm3, %v2434_v28, 0.0 }
 0x9c0   :  { %1559 = vadd.xlane.f32.xlu1 %v1558_v29 }
 0x9c2   :  { %v2436_v12 = vpop.eup %2435 }
 0x9c3   :  { %v1561_v10 = vsel %vm327_vm3, %v2436_v12, 0.0 }
 0x9c4   :  { %1562 = vadd.xlane.f32.xlu0 %v1561_v10 }
 0x9d1   :  { %2338 = vrot.lane.b32.xlu1 %v2653_v17, %s2555_s15 }
 0x9d5   :  { %2348 = vrot.lane.b32.xlu1 %v2347_v44, %s2544_s17 }
 0x9d9   :  { %2353 = vrot.lane.b32.xlu1 %v2352_v51, %s2544_s17 }
 0x9da   :  { %2343 = vrot.lane.b32.xlu0 %v2658_v18, %s2555_s15 }
 0x9dd   :  { %2363 = vrot.lane.b32.xlu1 %v2362_v22, %s2556_s16 }
 0x9de   :  { %2358 = vrot.lane.b32.xlu0 %v2357_v59, %s2556_s16 }
 0xa2e   :  { %v1557_v17 = vpop.xlane.xlu0 %1556 }
 0xa2f   :  { %v1554_v16 = vpop.xlane.xlu1 %1553 }
 0xa30   :  { %2437 = vrcp.f32 %v1554_v16 }
 0xa31   :  { %2439 = vrcp.f32 %v1557_v17 }
 0xa3a   :  { %v2438_v30 = vpop.eup %2437 }
 0xa3b   :  { %v1565_v31 = vmul.f32 %v2438_v30, %v2432_v14  ;;  %v2440_v18 = vpop.eup %2439 }
 0xa3c   :  { %v1567_v40 = vmul.f32 %v2440_v18, %v2430_v15 }
 0xa3d   :  { %2149 = vmatprep.mubr.msk.f32.mxu0 %vm327_vm3, %v1565_v31 }
 0xa4d   :  { %v1560_v42 = vpop.xlane.xlu1 %1559 }
 0xa4e   :  { %2441 = vrcp.f32 %v1560_v42 }
 0xa51   :  { %v2339_v43 = vpop.permute.xlu1 %2338  ;;  %v1563_v44 = vpop.xlane.xlu0 %1562 }
 0xa52   :  { %v2341_v32 = vunpack.i.h.bf16 %v2339_v43  ;;  %v2340_v49 = vunpack.i.l.bf16 %v2339_v43  ;;  %2443 = vrcp.f32 %v1563_v44 }
 0xa54   :  { %v2239_v50 = vpack.c.bf16 %v2341_v32, %v2340_v49 }
 0xa55   :  { %v2344_v51 = vpop.permute.xlu0 %2343  ;;  %v2349_v59 = vpop.permute.xlu1 %2348 }
 0xa56   :  { %v2346_v33 = vunpack.i.h.bf16 %v2344_v51  ;;  %v2345_v34 = vunpack.i.l.bf16 %v2344_v51  ;;  %2240 = vmatprep.subr.bf16.mxu0 %v2239_v50  ;;  %v2351_v62 = vunpack.i.h.bf16 %v2349_v59  ;;  %v2350_v63 = vunpack.i.l.bf16 %v2349_v59 }
 0xa57   :  { %2242 = vmatpush3.bf16.msra.mxu0 %v2239_v50 }
 0xa58   :  { %v2442_v39 = vpop.eup %2441  ;;  %v2243_v41 = vpack.c.bf16 %v2346_v33, %v2345_v34  ;;  %2159 = vmatprep.subr.bf16.mxu0 %v2379_v48  ;;  %v1795_v3 = vsel %vm154_vm1, %v2719_v35, %v2351_v62  ;;  %v1794_v4 = vsel %vm154_vm1, %v2721_v36, %v2350_v63 }
 0xa59   :  { %v1569_v45 = vmul.f32 %v2442_v39, %v2434_v28  ;;  %v2354_v60 = vpop.permute.xlu1 %2353  ;;  %v2359_v61 = vpop.permute.xlu0 %2358 }
 0xa5a   :  { %2150 = vmatmul.mubr.msk.f32.vlgmr.msra.gmra.mrb[12].mxu0 %vm327_vm3, %v1567_v40  ;;  %2244 = vmatprep.subr.bf16.mxu1 %v2243_v41  ;;  %v2361_v0 = vunpack.i.h.bf16 %v2359_v61  ;;  %v2360_v1 = vunpack.i.l.bf16 %v2359_v61  ;;  %v2356_v7 = vunpack.i.h.bf16 %v2354_v60  ;;  %v2355_v8 = vunpack.i.l.bf16 %v2354_v60 }
 0xa5b   :  { %2246 = vmatpush3.bf16.msra.mxu1 %v2243_v41  ;;  %2156 = vmatprep.mubr.msk.f32.mxu1 %vm327_vm3, %v1569_v45 }
 0xa5c   :  { %v2444_v46 = vpop.eup %2443  ;;  %2160 = vmatpush3.bf16.msra.mxu0 %v2379_v48  ;;  %v1799_v9 = vsel %vm327_vm3, %v1795_v3, %v2361_v0  ;;  %v1798_v11 = vsel %vm327_vm3, %v1794_v4, %v2360_v1  ;;  %v1797_v35 = vsel %vm154_vm1, %v2723_v37, %v2356_v7  ;;  %v1796_v36 = vsel %vm154_vm1, %v2725_v38, %v2355_v8  ;;  %v1962_v37 = vld [vmem:[%s2867_s4] ss:$0 sm:$0xff]  ;;  %s2511_s4 = scalar_lea.vmem %s1897_s22, 512 }
 0xa5d   :  { %v1571_v47 = vmul.f32 %v2444_v46, %v2436_v12  ;;  %2161 = vmatprep.subr.bf16.mxu0 %v2380_v52  ;;  %v2364_v22 = vpop.permute.xlu1 %2363  ;;  %p2512_p10 = scmp.ne.s32.totalorder %s1897_s22, %s2511_s4  ;;  %p2517_p12 = scmp.lt.s32.totalorder %s2511_s4, %s2511_s4 }
 0xa5e   :  { %v2366_v13 = vunpack.i.h.bf16 %v2364_v22  ;;  %v2365_v15 = vunpack.i.l.bf16 %v2364_v22 }
 0xa5f   :  { %2157 = vmatmul.mubr.msk.f32.vlgmr.msra.gmra.mrb[20].mxu1 %vm327_vm3, %v1571_v47  ;;  %p2518_p13 = por %p2517_p12, %p2516_p11 }
 0xa60   :  { %2162 = vmatpush3.bf16.msra.mxu0 %v2380_v52  ;;  %v1800_v25 = vsel %vm327_vm3, %v1796_v36, %v2365_v15  ;;  %v1801_v26 = vsel %vm327_vm3, %v1797_v35, %v2366_v13 }
 0xa61   :  { %p2519_p0 = pnand %p2518_p13, %p2512_p10 }
 0xb2d   :  { %v2151_v53 = vpop.f32.mrb[12].mxu0 }
 0xb2e   :  { %v1650_v54 = vpop.f32.mrb[13].mxu0 }
 0xb2f   :  { %v2367_v55 = vpack.i.bf16 %v2151_v53, %v1650_v54 }
 0xb31   :  { %2368 = vrot.lane.b32.xlu0 %v2367_v55, %s2557_s18 }
 0xb32   :  { %v2158_v56 = vpop.f32.mrb[20].mxu1 }
 0xb33   :  { %v1737_v57 = vpop.f32.mrb[21].mxu1 }
 0xb34   :  { %v2372_v58 = vpack.i.bf16 %v2158_v56, %v1737_v57 }
 0xb36   :  { %2373 = vrot.lane.b32.xlu1 %v2372_v58, %s2557_s18 }
 0xba3   :  { %v2369_v2 = vpop.permute.xlu0 %2368 }
 0xba4   :  { %v2371_v5 = vunpack.i.h.bf16 %v2369_v2  ;;  %v2370_v6 = vunpack.i.l.bf16 %v2369_v2 }
 0xba6   :  { %v1803_v14 = vsel %vm1802_vm4, %v1798_v11, %v2370_v6  ;;  %v1804_v19 = vsel %vm1802_vm4, %v1799_v9, %v2371_v5 }
 0xba7   :  { %v1807_v20 = vpack.c.bf16 %v1804_v19, %v1803_v14 }
 0xba8   :  { %v2374_v21 = vpop.permute.xlu1 %2373 }
 0xba9   :  { %v2376_v23 = vunpack.i.h.bf16 %v2374_v21  ;;  %v2375_v24 = vunpack.i.l.bf16 %v2374_v21  ;;  %2163 = vmatprep.mubr.msk.bf16.mxu0 %vm92_vm0, %v1807_v20 }
 0xbab   :  { %v1806_v27 = vsel %vm1802_vm4, %v1801_v26, %v2376_v23  ;;  %v1805_v28 = vsel %vm1802_vm4, %v1800_v25, %v2375_v24 }
 0xbac   :  { %v1808_v29 = vpack.c.bf16 %v1806_v27, %v1805_v28 }
 0xbae   :  { %2164 = vmatmul.mubr.msk.bf16.vlgmr.msra.gmra.mrb[16].mxu0 %vm92_vm0, %v1808_v29 }
 0xc81   :  { %v2165_v38 = vpop.f32.mrb[16].mxu0 }
 0xc82   :  { %v1881_v12 = vadd.f32 %v2165_v38, %v1962_v37  ;;  %v1872_v10 = vpop.f32.mrb[17].mxu0 }
 0xc83   :  { %v1873_v16 = vadd.f32 %v1962_v37, %v1872_v10  ;;  %v2166_v30 = vpop.f32.mrb[18].mxu0 }
 0xc84   :  { %1889 = vst.msk [vmem:[#allocation8 + $0x10] sm:$0xff] %vm92_vm0, %v1881_v12  ;;  %v1884_v31 = vadd.f32 %v2166_v30, %v1962_v37  ;;  %v1875_v17 = vpop.f32.mrb[19].mxu0 }
 0xc85   :  { %1887 = vst.msk [vmem:[#allocation8] sm:$0xff] %vm92_vm0, %v1873_v16  ;;  %v1876_v42 = vadd.f32 %v1962_v37, %v1875_v17 }
 0xc86   :  { %1890 = vst.msk [vmem:[#allocation8 + $0x18] sm:$0xff] %vm92_vm0, %v1884_v31 }
 0xc87   :  { %1888 = vst.msk [vmem:[#allocation8 + $0x8] sm:$0xff] %vm92_vm0, %v1876_v42 }
 0xc88   :  { %2522 = shalt.err (!%p2519_p0)
}
 0xc89   :  { %s2523_s25 = scalar_lea.hbm %s2868_s5, 512 }
 0xc8a   :  { %p2524_p1 = scmp.ne.s32.totalorder %s2868_s5, %s2523_s25  ;;  %p2527_p2 = scmp.lt.u32.totalorder %s2523_s25, %s2868_s5 }
 0xc8c   :  { %p2529_p3 = pnand %p2527_p2, %p2524_p1 }
 0xc8e   :  { %2532 = shalt.err (!%p2529_p3)
}
 0xc8f   :  { %1902 = dma.vmem_to_hbm [thread:$0]  %s1897_s22, 512, %s2868_s5, [#allocation4], %s2543_s1, %s2543_s1, %s2544_s17  }
 0xc90   :  { %2537 = dma.done.wait [#allocation4], 512  }
 0xc91   :  { %2538 = vsyncadd [#allocation4], 4294966784 }
 0xc92   :  { %1906 = vsyncpa [#allocation3], 1 }
 0xc93   :  { %1907 = vsyncpa [#allocation6], 1 }
 0xc94   :  { %1908 = vsyncpa [#allocation4], 1 }

</bundles_post_ra>
